<compile_context>
chip_gen: v7x
topology: tpu7x:2x2x1
jax: 0.10.0
libtpu: 0.0.40
codegen_flags: <defaults>
</compile_context>

<pallas_src>
import jax
import jax.numpy as jnp
from jax import lax
from jax.experimental import pallas as pl
from jax.experimental.pallas import tpu as pltpu


def _transition_sample_kernel(logp_ref, invp_ref, gsum_ref, u_ref, xs_ref, lq_ref):
    """One grid step: draw TS independent samples from q and score them.

    logp_ref : (k, N)      normalized log-probs, N = B*d on the lane axis
    invp_ref : (k, N)      exp(-logp)
    gsum_ref : (N, B)      0/1 group-sum matrix (sums over d per sequence b)
    u_ref    : (TS, k, N)  uniforms for this block of samples
    xs_ref   : (TS, N)     sampled categories (int32)
    lq_ref   : (TS, B)     log q(Xs)
    """
    logp = logp_ref[...]
    invp = invp_ref[...]
    u = jnp.maximum(u_ref[...], jnp.float32(1e-30))       # guard log(0)

    # Exponential race == Gumbel-max:  argmin_k (-log u_k) * exp(-logp_k).
    e = -jnp.log(u)                                       # (TS, k, N), 1 EUP log/elem
    scores = e * invp[None]                               # (TS, k, N)
    smin = jnp.min(scores, axis=1, keepdims=True)         # (TS, 1, N)
    is_min = scores <= smin                               # (TS, k, N)

    k = scores.shape[1]
    iota = lax.broadcasted_iota(jnp.int32, scores.shape, 1)
    cat = jnp.min(jnp.where(is_min, iota, k), axis=1)     # (TS, N) first-min tie-break

    # Reuse the mask for the log-prob gather (no one-hot rebuild).
    sel = jnp.max(jnp.where(is_min, logp[None], -jnp.inf), axis=1)   # (TS, N)

    xs_ref[...] = cat
    # Per-sequence sum over d: (TS, N) @ (N, B) on the (otherwise idle) MXU.
    lq_ref[...] = jnp.dot(sel, gsum_ref[...], preferred_element_type=jnp.float32)


def transition_forward(T, bias, X0, U, return_X0=False, samples_per_step=8):
    """Pallas implementation of TransitionSearchDistribution.forward.

    T    : (k, k)       f32 transition logits
    bias : (d, k)       f32 per-position logits
    X0   : (B, d)       int32 conditioning sequences
    U    : (S, k, B*d)  f32 uniforms in (0, 1) driving the sampler;
                        U[s, c, b*d + j] is the uniform for sample s, category c,
                        position (b, j).  (Lane-dense layout: B*d on lanes.)
    """
    S = U.shape[0]
    B, d = X0.shape
    k = T.shape[0]
    N = B * d
    assert U.shape == (S, k, N)

    # --- tiny XLA precompute (glue): normalized log-probs, lane-dense (k, N) ---
    logits = T[X0] + bias[None]                           # (B, d, k)
    logp_bdk = jax.nn.log_softmax(logits, axis=-1)        # (B, d, k)
    logp = logp_bdk.reshape(N, k).T                       # (k, N)
    invp = jnp.exp(-logp)                                 # (k, N)

    # Group-sum matrix: gsum[b*d + j, b] = 1  (sums selected logp over d).
    gsum = (lax.broadcasted_iota(jnp.int32, (N, B), 0) // d
            == lax.broadcasted_iota(jnp.int32, (N, B), 1)).astype(jnp.float32)

    ts = min(samples_per_step, S)
    while S % ts:
        ts -= 1

    const2 = lambda s: (0, 0)

    xs, lq = pl.pallas_call(
        _transition_sample_kernel,
        out_shape=(
            jax.ShapeDtypeStruct((S, N), jnp.int32),
            jax.ShapeDtypeStruct((S, B), jnp.float32),
        ),
        grid_spec=pltpu.PrefetchScalarGridSpec(
            num_scalar_prefetch=0,
            grid=(S // ts,),
            in_specs=[
                pl.BlockSpec((k, N), const2),                   # logp (resident const)
                pl.BlockSpec((k, N), const2),                   # inv_p (resident const)
                pl.BlockSpec((N, B), const2),                   # group-sum matrix
                pl.BlockSpec((ts, k, N), lambda s: (s, 0, 0)),  # U block (TS samples)
            ],
            out_specs=[
                pl.BlockSpec((ts, N), lambda s: (s, 0)),        # Xs slab (lane-dense)
                pl.BlockSpec((ts, B), lambda s: (s, 0)),        # log q
            ],
        ),
        compiler_params=pltpu.CompilerParams(
            # Samples are independent now (logp precomputed) -> shard across TCs.
            dimension_semantics=("parallel",),
            vmem_limit_bytes=32 * 1024 * 1024,
        ),
    )(logp, invp, gsum, U)

    Xs = xs.reshape(S * B, d)      # free row-major view; matches Xs.reshape(-1, d)
    logq = lq.reshape(S * B)       # matches logqX.flatten()
    if return_X0:
        return Xs, logq, jnp.tile(X0, (S, 1))   # matches X0.tile((samples, 1))
    return Xs, logq


def _reference_forward(T, bias, X0, U):
    """Pure-JAX reference with identical sampling semantics (same U)."""
    S, k, N = U.shape
    B, d = X0.shape
    logits = T[X0] + bias[None]                                   # (B, d, k)
    logp = jax.nn.log_softmax(logits, axis=-1).reshape(N, k).T    # (k, N)
    invp = jnp.exp(-logp)
    e = -jnp.log(jnp.maximum(U, 1e-30))                           # (S, k, N)
    scores = e * invp[None]
    smin = jnp.min(scores, axis=1, keepdims=True)
    is_min = scores <= smin
    iota = lax.broadcasted_iota(jnp.int32, scores.shape, 1)
    cat = jnp.min(jnp.where(is_min, iota, k), axis=1)             # (S, N)
    sel = jnp.max(jnp.where(is_min, logp[None], -jnp.inf), axis=1)  # (S, N)
    logq = sel.reshape(S, B, d).sum(axis=-1)                      # (S, B)
    return cat.reshape(S * B, d), logq.reshape(S * B)


if __name__ == "__main__":
    key = jax.random.PRNGKey(0)
    d_features, k_categories = 32, 8
    batch, samples = 4, 16            # B*d = 128 -> exactly one full lane width

    k1, k2, k3, k4 = jax.random.split(key, 4)
    # Deterministic "learned" parameters (synthetic init, no checkpoint load).
    T = 0.5 * jax.random.normal(k1, (k_categories, k_categories), jnp.float32)
    bias = 0.1 * jax.random.normal(k2, (d_features, k_categories), jnp.float32)
    # Conditioning sequences X0 and the uniforms that drive the sampler.
    X0 = jax.random.randint(k3, (batch, d_features), 0, k_categories, jnp.int32)
    U = jax.random.uniform(
        k4, (samples, k_categories, batch * d_features), jnp.float32,
        minval=1e-6, maxval=1.0 - 1e-6)

    Xs, logq, X0_tiled = transition_forward(T, bias, X0, U, return_X0=True)
    jax.block_until_ready((Xs, logq, X0_tiled))

    # Sanity check against a pure-JAX reference using the same randoms.
    Xs_ref, logq_ref = _reference_forward(T, bias, X0, U)
    assert Xs.shape == (samples * batch, d_features)
    assert logq.shape == (samples * batch,)
    assert X0_tiled.shape == (samples * batch, d_features)
    assert bool(jnp.all((Xs >= 0) & (Xs < k_categories)))
    assert bool(jnp.all(Xs == Xs_ref))
    assert bool(jnp.allclose(logq, logq_ref, atol=1e-4, rtol=1e-4))

    print("KERNEL_OK")
</pallas_src>

<mosaic_0001>
module attributes {stable_mosaic.version = 11 : i64} {
  func.func @_transition_sample_kernel(%arg0: i32, %arg1: memref<8x128xf32, #tpu.memory_space<vmem>>, %arg2: memref<8x128xf32, #tpu.memory_space<vmem>>, %arg3: memref<128x4xf32, #tpu.memory_space<vmem>>, %arg4: memref<8x8x128xf32, #tpu.memory_space<vmem>>, %arg5: memref<8x128xi32, #tpu.memory_space<vmem>>, %arg6: memref<8x4xf32, #tpu.memory_space<vmem>>) attributes {dimension_semantics = [#tpu.dimension_semantics<parallel>], iteration_bounds = array<i64: 2>, scalar_prefetch = 0 : i64, scratch_operands = 0 : i64, tpu.core_type = #tpu.core_type<tc>, window_params = [{pipeline_mode = #tpu.pipeline_mode<synchronous>, transform_indices = @transform_0, window_bounds = array<i64: 8, 128>}, {pipeline_mode = #tpu.pipeline_mode<synchronous>, transform_indices = @transform_1, window_bounds = array<i64: 8, 128>}, {pipeline_mode = #tpu.pipeline_mode<synchronous>, transform_indices = @transform_2, window_bounds = array<i64: 128, 4>}, {transform_indices = @transform_3, window_bounds = array<i64: 8, 8, 128>}, {transform_indices = @transform_4, window_bounds = array<i64: 8, 128>}, {transform_indices = @transform_5, window_bounds = array<i64: 8, 4>}]} {
    %c0 = arith.constant 0 : index
    %c0_0 = arith.constant 0 : index
    %0 = vector.load %arg1[%c0, %c0_0] : memref<8x128xf32, #tpu.memory_space<vmem>>, vector<8x128xf32>
    %c0_1 = arith.constant 0 : index
    %c0_2 = arith.constant 0 : index
    %1 = vector.load %arg2[%c0_1, %c0_2] : memref<8x128xf32, #tpu.memory_space<vmem>>, vector<8x128xf32>
    %c0_3 = arith.constant 0 : index
    %c0_4 = arith.constant 0 : index
    %c0_5 = arith.constant 0 : index
    %2 = vector.load %arg4[%c0_3, %c0_4, %c0_5] : memref<8x8x128xf32, #tpu.memory_space<vmem>>, vector<8x8x128xf32>
    %cst = arith.constant 1.000000e-30 : f32
    %3 = vector.broadcast %cst : f32 to vector<8x8x128xf32>
    %4 = arith.maximumf %2, %3 : vector<8x8x128xf32>
    %5 = math.log %4 : vector<8x8x128xf32>
    %cst_6 = arith.constant 0.000000e+00 : f32
    %6 = vector.broadcast %cst_6 : f32 to vector<8x8x128xf32>
    %7 = arith.subf %6, %5 : vector<8x8x128xf32>
    %8 = vector.shape_cast %1 : vector<8x128xf32> to vector<1x8x128xf32>
    %9 = vector.broadcast %8 : vector<1x8x128xf32> to vector<8x8x128xf32>
    %10 = arith.mulf %7, %9 : vector<8x8x128xf32>
    %cst_7 = arith.constant dense<0x7F800000> : vector<8x128xf32>
    %11 = vector.multi_reduction <minimumf>, %10, %cst_7 [1] : vector<8x8x128xf32> to vector<8x128xf32>
    %12 = vector.shape_cast %11 : vector<8x128xf32> to vector<8x1x128xf32>
    %13 = vector.broadcast %12 : vector<8x1x128xf32> to vector<8x8x128xf32>
    %14 = arith.cmpf ole, %10, %13 : vector<8x8x128xf32>
    %15 = tpu.iota {dimensions = array<i32: 1>} : vector<8x8x128xi32>
    %c8_i32 = arith.constant 8 : i32
    %16 = vector.broadcast %c8_i32 : i32 to vector<8x8x128xi32>
    %17 = arith.select %14, %15, %16 : vector<8x8x128xi1>, vector<8x8x128xi32>
    %cst_8 = arith.constant dense<2147483647> : vector<8x128xi32>
    %18 = vector.multi_reduction <minsi>, %17, %cst_8 [1] : vector<8x8x128xi32> to vector<8x128xi32>
    %19 = vector.shape_cast %0 : vector<8x128xf32> to vector<1x8x128xf32>
    %cst_9 = arith.constant 0xFF800000 : f32
    %20 = vector.shape_cast %19 : vector<1x8x128xf32> to vector<1x8x128xf32>
    %21 = vector.broadcast %20 : vector<1x8x128xf32> to vector<8x8x128xf32>
    %22 = vector.broadcast %cst_9 : f32 to vector<8x8x128xf32>
    %23 = arith.select %14, %21, %22 : vector<8x8x128xi1>, vector<8x8x128xf32>
    %cst_10 = arith.constant dense<0xFF800000> : vector<8x128xf32>
    %24 = vector.multi_reduction <maximumf>, %23, %cst_10 [1] : vector<8x8x128xf32> to vector<8x128xf32>
    %c0_11 = arith.constant 0 : index
    %c0_12 = arith.constant 0 : index
    %25 = vector.load %arg5[%c0_11, %c0_12] : memref<8x128xi32, #tpu.memory_space<vmem>>, vector<8x128xi32>
    tpu.vector_store %arg5[%c0_11, %c0_12], %18 {strides = array<i32>} : memref<8x128xi32, #tpu.memory_space<vmem>>, vector<8x128xi32>,
    %c0_13 = arith.constant 0 : index
    %c0_14 = arith.constant 0 : index
    %26 = vector.load %arg3[%c0_13, %c0_14] : memref<128x4xf32, #tpu.memory_space<vmem>>, vector<128x4xf32>
    %cst_15 = arith.constant dense<0.000000e+00> : vector<8x4xf32>
    %27 = tpu.matmul %24, %26, %cst_15 {dimension_numbers = #tpu.dot_dimension_numbers<[1], [0], [0], [1], [0, 0, 1, 1], [], []>} : vector<8x128xf32>, vector<128x4xf32>, vector<8x4xf32> -> vector<8x4xf32>
    %c0_16 = arith.constant 0 : index
    %c0_17 = arith.constant 0 : index
    %28 = vector.load %arg6[%c0_16, %c0_17] : memref<8x4xf32, #tpu.memory_space<vmem>>, vector<8x4xf32>
    tpu.vector_store %arg6[%c0_16, %c0_17], %27 {strides = array<i32>} : memref<8x4xf32, #tpu.memory_space<vmem>>, vector<8x4xf32>,
    return
  }
  func.func @transform_0(%arg0: i32) -> (i32, i32) {
    %c0_i32 = arith.constant 0 : i32
    %c0_i32_0 = arith.constant 0 : i32
    %c0_i32_1 = arith.constant 0 : i32
    return %c0_i32, %c0_i32_0 : i32, i32
  }
  func.func @transform_1(%arg0: i32) -> (i32, i32) {
    %c0_i32 = arith.constant 0 : i32
    %c0_i32_0 = arith.constant 0 : i32
    %c0_i32_1 = arith.constant 0 : i32
    return %c0_i32, %c0_i32_0 : i32, i32
  }
  func.func @transform_2(%arg0: i32) -> (i32, i32) {
    %c0_i32 = arith.constant 0 : i32
    %c0_i32_0 = arith.constant 0 : i32
    %c0_i32_1 = arith.constant 0 : i32
    return %c0_i32, %c0_i32_0 : i32, i32
  }
  func.func @transform_3(%arg0: i32) -> (i32, i32, i32) {
    %c0_i32 = arith.constant 0 : i32
    %c0_i32_0 = arith.constant 0 : i32
    %c0_i32_1 = arith.constant 0 : i32
    return %arg0, %c0_i32, %c0_i32_0 : i32, i32, i32
  }
  func.func @transform_4(%arg0: i32) -> (i32, i32) {
    %c0_i32 = arith.constant 0 : i32
    %c0_i32_0 = arith.constant 0 : i32
    return %arg0, %c0_i32 : i32, i32
  }
  func.func @transform_5(%arg0: i32) -> (i32, i32) {
    %c0_i32 = arith.constant 0 : i32
    %c0_i32_0 = arith.constant 0 : i32
    return %arg0, %c0_i32 : i32, i32
  }
}

</mosaic_0001>

<bundles_post_ra>
// kernel: tpu_custom_call.1
= control target key start
LH: loop header
LB: loop body
LE: loop exit
PB: predicated region body
PF: predicated region fallthrough
CT: control target
= control target key end

     0   :  { %11 = vsyncpa [#allocation3], 0  ;;  %s1365_s0 = inlined_call_operand.vmem [shape: f32[8,128], index: 0, kind: input, shape index: {}]   ;;  %s1366_s1 = inlined_call_operand.hbm [shape: f32[8,128], index: 1, kind: input, shape index: {}]   ;;  %s1367_s2 = inlined_call_operand.vmem [shape: f32[128,4], index: 2, kind: input, shape index: {}]   ;;  %s1368_s3 = inlined_call_operand.vmem [shape: f32[16,8,128], index: 3, kind: input, shape index: {}]   ;;  %s1369_s4 = inlined_call_operand.hbm [shape: s32[16,128], index: 4, kind: output, shape index: {0}]   ;;  %s1370_s5 = inlined_call_operand.vmem [shape: f32[16,4], index: 5, kind: output, shape index: {1}]  }
   0x1   :  { %12 = vsyncpa [#allocation4], 0 }
   0x2   :  { %14 = vsyncpa [#allocation4 + $0x1], 0  ;;  %s1018_s18 = smov 0   ;;  %s1020_s19 = smov 0  }
   0x3   :  { %s1022_s20 = smov 0   ;;  %s1024_s21 = smov 0  }
   0x4 LB: > { %s1039_s22 = sadd.s32 4294967295, %s981_s21   ;;  %s728_s23 = sadd.s32 4294967294, %s981_s21   ;;  %s981_s21 = sphi %s1024_s21, %s1388_s21   ;;  %s977_s20 = sphi %s1022_s20, %s1387_s20   ;;  %s973_s19 = sphi %s1020_s19, %s1386_s19   ;;  %s969_s18 = sphi %s1018_s18, %s1385_s18  }
   0x5   : > { %s1043_s24 = sadd.s32 1, %s981_s21   ;;  %s116_s25 = sadd.s32 1, %s977_s20 }
   0x6   : > { %s113_s26 = ssub.s32 %s981_s21, %s1043_s24  ;;  %p126_p0 = scmp.ne.s32.totalorder %s977_s20, %s973_s19 }
   0x7   : > { %p114_p1 = scmp.eq.s32.totalorder %s113_s26, 0  ;;  %p127_p2 = scmp.eq.s32.totalorder %s1039_s22, 1 }
   0x8   : > { %p132_p3 = scmp.ne.s32.totalorder %s973_s19, %s969_s18  ;;  %p133_p4 = scmp.eq.s32.totalorder %s728_s23, 1 }
   0x9   : > { %s1054_s27 = scalar_select %p114_p1, %s977_s20, %s116_s25  }
   0xa   : > { %p1056_p5 = por %p127_p2, %p126_p0  ;;  %p1060_p6 = por %p133_p4, %p132_p3 }
   0xb   : > { %p729_p7 = scmp.ge.s32.totalorder %s981_s21, 1  ;;  %p166_p8 = scmp.lt.s32.totalorder %s981_s21, 3 }
   0xc   : > { %s1374_s28 = scalar_select %p1056_p5, 1, 0 }
   0xd   : > { %s1375_s29 = scalar_select %p1060_p6, 1, 0 }
   0xe   : > { %p1371_p9 = scmp.eq.s32.totalorder %s1039_s22, 0  ;;  %p1067_p10 = pnand %p729_p7, %p166_p8 }
   0xf   : > { %s983_s6 = smov [#allocation2]   ;;  %s887_s11 = scalar_lea.hbm %s1366_s1, 128 }
  0x10   : > { %s1376_s30 = scalar_select %p1067_p10, 1, 0 }
  0x11   : > { %s182_s7 = sshll.u32 %s983_s6, 4  ;;  %p824_p11 = pneg %p1067_p10  ;;  %s183_s7 = int_to_ptr.vmem [resolvable:$true] %s182_s7 }
  0x12   : > { %p888_p13 = scmp.ne.s32.totalorder %s1366_s1, %s887_s11  ;;  %p894_p3 = scmp.lt.u32.totalorder %s887_s11, %s1366_s1 }
  0x13   : > { %p1075_p12 = pnand %p1371_p9, %p824_p11 }
  0x15   : > { %p889_p0 = pneg %p1075_p12 }
  0x17   : > { %p890_p1 = pnand %p889_p0, %p888_p13 }
  0x19   : > { %p891_p2 = pneg %p890_p1 }
  0x1b   : > { %p896_p4 = pnand %p894_p3, %p891_p2 }
  0x1d   : > { %899 = shalt.err (!%p896_p4)
}
  0x1e   : > { %s900_s16 = scalar_lea.vmem %s183_s7, 128  ;;  %p908_p9 = scmp.lt.s32.totalorder %s183_s7, %s183_s7 }
  0x1f   : > { %p901_p7 = scmp.ne.s32.totalorder %s183_s7, %s900_s16  ;;  %p909_p6 = scmp.lt.s32.totalorder %s900_s16, %s900_s16 }
  0x21   : > { %p903_p8 = pnand %p901_p7, %p889_p0  ;;  %p910_p5 = por %p909_p6, %p908_p9 }
  0x23   : > { %p904_p11 = pneg %p903_p8 }
  0x25   : > { %p911_p10 = pnand %p910_p5, %p904_p11 }
  0x27   : > { %914 = shalt.err (!%p911_p10)
}
  0x28   : > { %827 = dma.hbm_to_vmem [thread:$0]  (!%p1075_p12), %s1366_s1, 128, %s183_s7, [#allocation3]  }
  0x29   : > { %p1378_p13 = scmp.ne.s32.totalorder %s1376_s30, 0 }
  0x2a   : > { %p1379_p1 = scmp.eq.s32.totalorder (!%p1378_p13), %s1039_s22, 0 }
  0x2b   : > { %207 = sbr.rel (%p1378_p13) target bundleno = 349 (0x15d), region = 36 }
  0x32   : > { %960 = dma.done.wait (%p1379_p1), [#allocation3], 128   ;;  %p1380_p0 = pmov %p1379_p1 }
  0x33   : > { %s735_s25 = sshll.u32 %s1039_s22, 3  ;;  %v984_v0 = vmov 0.0|0.0   ;;  %vm985_vm0 = vmmov 0   ;;  %v986_v1 = vmov 0.0   ;;  %v508_v2 = vld [vmem:[%s1367_s2] sm:$0xff]  ;;  %v509_v3 = vld [vmem:[%s1367_s2 + $0x8] sm:$0xff]  ;;  %v355_v41 = vlaneseq }
  0x34   : > { %962 = vsyncadd (%p1380_p0), [#allocation3], 4294967168  ;;  %794 = vmatprep.subr.bf16.mxu0 %v984_v0  ;;  %791 = vmatprep.mubr.msk.f32.mxu0 %vm985_vm0, %v986_v1  ;;  %p240_p5 = scmp.lt.s32.totalorder %s735_s25, 15  ;;  %v510_v4 = vld [vmem:[%s1367_s2 + $0x10] sm:$0xff]  ;;  %v795_v5 = vpack.c.bf16 %v509_v3, %v508_v2  ;;  %v511_v6 = vld [vmem:[%s1367_s2 + $0x18] sm:$0xff]  ;;  %s739_s13 = sshll.u32 %s1039_s22, 7 }
  0x35   : > { %v798_v7 = vpack.c.bf16 %v511_v6, %v510_v4  ;;  %v512_v8 = vld [vmem:[%s1367_s2 + $0x20] sm:$0xff]  ;;  %v513_v9 = vld [vmem:[%s1367_s2 + $0x28] sm:$0xff]  ;;  %v514_v10 = vld [vmem:[%s1367_s2 + $0x30] sm:$0xff]  ;;  %v1162_v58 = vshrl.u32 %v355_v41, 7  ;;  %s1324_s17 = scalar_lea.hbm %s1369_s4, %s739_s13  ;;  %p1383_p9 = scmp.ne.s32.totalorder %s1374_s28, 0 }
  0x36   : > { %s1390_s25 = smov (!%p240_p5, %s735_s25), 15  ;;  %796 = vmatpush3.bf16.msra.mxu0 %v795_v5  ;;  %v801_v14 = vpack.c.bf16 %v513_v9, %v512_v8  ;;  %v515_v19 = vld [vmem:[%s1367_s2 + $0x38] sm:$0xff]  ;;  %v516_v29 = vld [vmem:[%s1367_s2 + $0x40] sm:$0xff]  ;;  %v517_v30 = vld [vmem:[%s1367_s2 + $0x48] sm:$0xff] }
  0x37   : > { %s736_s10 = sshll.u32 %s1390_s25, 3  ;;  %797 = vmatprep.subr.bf16.mxu0 %v984_v0  ;;  %v804_v27 = vpack.c.bf16 %v515_v19, %v514_v10  ;;  %v807_v32 = vpack.c.bf16 %v517_v30, %v516_v29  ;;  %v518_v33 = vld [vmem:[%s1367_s2 + $0x50] sm:$0xff]  ;;  %v519_v34 = vld [vmem:[%s1367_s2 + $0x58] sm:$0xff]  ;;  %v520_v38 = vld [vmem:[%s1367_s2 + $0x60] sm:$0xff]  ;;  %s987_s25 = smov [#allocation5]  }
  0x38   : > { %s243_s15 = scalar_lea.vmem %s1368_s3, %s736_s10  ;;  %v810_v36 = vpack.c.bf16 %v519_v34, %v518_v33  ;;  %v521_v39 = vld [vmem:[%s1367_s2 + $0x68] sm:$0xff]  ;;  %v250_v43 = vld [vmem:[#allocation2] sm:$0xff]  ;;  %v522_v46 = vld [vmem:[%s1367_s2 + $0x70] sm:$0xff]  ;;  %s230_s10 = sand.u32 1, %s973_s19  }
  0x39   : > { %v251_v11 = vld [vmem:[%s243_s15] sm:$0xff]  ;;  %v252_v12 = vld [vmem:[%s243_s15 + $0x8] sm:$0xff]  ;;  %v253_v13 = vld [vmem:[%s243_s15 + $0x10] sm:$0xff]  ;;  %v813_v51 = vpack.c.bf16 %v521_v39, %v520_v38  ;;  %s734_s11 = sshll.u32 %s230_s10, 3  ;;  %s613_s23 = scalar_lea.sflag [#allocation4], %s230_s10 }
  0x3a   : > { %799 = vmatpush3.bf16.msra.mxu0 %v798_v7  ;;  %v254_v15 = vld [vmem:[%s243_s15 + $0x18] sm:$0xff]  ;;  %v255_v16 = vld [vmem:[%s243_s15 + $0x20] sm:$0xff]  ;;  %v256_v17 = vld [vmem:[%s243_s15 + $0x28] sm:$0xff]  ;;  %v259_v18 = vmax.f32 %v251_v11, 1e-30  ;;  %s232_s12 = scalar_lea.vmem [#allocation5], %s734_s11 }
  0x3b   : > { %800 = vmatprep.subr.bf16.mxu0 %v984_v0  ;;  %v257_v20 = vld [vmem:[%s243_s15 + $0x30] sm:$0xff]  ;;  %v260_v21 = vmax.f32 %v252_v12, 1e-30  ;;  %v261_v22 = vmax.f32 %v253_v13, 1e-30  ;;  %v258_v23 = vld [vmem:[%s243_s15 + $0x38] sm:$0xff] }
  0x3c   : > { %v262_v24 = vmax.f32 %v254_v15, 1e-30  ;;  %v263_v25 = vmax.f32 %v255_v16, 1e-30  ;;  %871 = vlog2.f32 %v259_v18  ;;  %v264_v26 = vmax.f32 %v256_v17, 1e-30 }
  0x3d   : > { %873 = vlog2.f32 %v260_v21  ;;  %v265_v28 = vmax.f32 %v257_v20, 1e-30  ;;  %v266_v31 = vmax.f32 %v258_v23, 1e-30  ;;  %v523_v47 = vld [vmem:[%s1367_s2 + $0x78] sm:$0xff]  ;;  %s630_s14 = sshll.u32 %s232_s12, 4  ;;  %s631_s14 = int_to_ptr.vmem [resolvable:$true] %s630_s14 }
  0x3e   : > { %802 = vmatpush3.bf16.msra.mxu0 %v801_v14  ;;  %875 = vlog2.f32 %v261_v22  ;;  %v816_v60 = vpack.c.bf16 %v523_v47, %v522_v46  ;;  %s915_s26 = scalar_lea.vmem %s631_s14, 128  ;;  %s919_s6 = sshll.u32 %s987_s25, 4  ;;  %s920_s6 = int_to_ptr.vmem [resolvable:$false] %s919_s6 }
  0x3f   : > { %803 = vmatprep.subr.bf16.mxu0 %v984_v0  ;;  %877 = vlog2.f32 %v262_v24  ;;  %p916_p6 = scmp.ne.s32.totalorder %s631_s14, %s915_s26  ;;  %s921_s30 = scalar_lea.vmem %s920_s6, 256 }
  0x40   : > { %879 = vlog2.f32 %v263_v25  ;;  %p922_p2 = scmp.lt.s32.totalorder %s631_s14, %s920_s6  ;;  %p923_p3 = scmp.lt.s32.totalorder %s921_s30, %s915_s26 }
  0x41   : > { %881 = vlog2.f32 %v264_v26  ;;  %p917_p10 = pnand %p916_p6, %p1383_p9 }
  0x42   : > { %805 = vmatpush3.bf16.msra.mxu0 %v804_v27  ;;  %883 = vlog2.f32 %v265_v28  ;;  %p924_p4 = por %p923_p3, %p922_p2 }
  0x43   : > { %806 = vmatprep.subr.bf16.mxu0 %v984_v0  ;;  %885 = vlog2.f32 %v266_v31  ;;  %p918_p12 = pneg %p917_p10 }
  0x45   : > { %p925_p7 = pnand %p924_p4, %p918_p12 }
  0x46   : > { %v872_v35 = vpop.eup %871  ;;  %808 = vmatpush3.bf16.msra.mxu0 %v807_v32 }
  0x47   : > { %v874_v37 = vpop.eup %873  ;;  %809 = vmatprep.subr.bf16.mxu0 %v984_v0  ;;  %v268_v40 = vmul.f32 0.6931472, %v872_v35 }
  0x48   : > { %v876_v42 = vpop.eup %875  ;;  %v270_v44 = vmul.f32 0.6931472, %v874_v37 }
  0x49   : > { %v878_v45 = vpop.eup %877  ;;  %v272_v48 = vmul.f32 0.6931472, %v876_v42  ;;  %v283_v49 = vsub.f32 0.0, %v268_v40 }
  0x4a   : > { %v880_v50 = vpop.eup %879  ;;  %811 = vmatpush3.bf16.msra.mxu0 %v810_v36  ;;  %v274_v52 = vmul.f32 0.6931472, %v878_v45  ;;  %v284_v53 = vsub.f32 0.0, %v270_v44 }
  0x4b   : > { %v882_v54 = vpop.eup %881  ;;  %812 = vmatprep.subr.bf16.mxu0 %v984_v0  ;;  %v276_v55 = vmul.f32 0.6931472, %v880_v50  ;;  %v285_v56 = vsub.f32 0.0, %v272_v48  ;;  %v1160_v57 = vmul.f32 %v283_v49, %v250_v43 }
  0x4c   : > { %v884_v59 = vpop.eup %883  ;;  %v278_v61 = vmul.f32 0.6931472, %v882_v54  ;;  %v286_v62 = vsub.f32 0.0, %v274_v52  ;;  %v1164_v63 = vmul.f32 %v284_v53, %v250_v43 }
  0x4d   : > { %v886_v1 = vpop.eup %885  ;;  %v280_v2 = vmul.f32 0.6931472, %v884_v59  ;;  %v287_v3 = vsub.f32 0.0, %v276_v55  ;;  %v1166_v4 = vmul.f32 %v285_v56, %v250_v43  ;;  %v299_v5 = vrot.slane %v1160_v57, 4 }
  0x4e   : > { %814 = vmatpush3.bf16.msra.mxu0 %v813_v51  ;;  %v282_v6 = vmul.f32 0.6931472, %v886_v1  ;;  %v288_v7 = vsub.f32 0.0, %v278_v61  ;;  %v1169_v8 = vmul.f32 %v286_v62, %v250_v43  ;;  %v305_v9 = vrot.slane %v1164_v63, 4 }
  0x4f   : > { %815 = vmatprep.subr.bf16.mxu0 %v984_v0  ;;  %v289_v10 = vsub.f32 0.0, %v280_v2  ;;  %v1173_v11 = vmul.f32 %v287_v3, %v250_v43  ;;  %v300_v12 = vmin.f32 %v1160_v57, %v299_v5  ;;  %v311_v13 = vrot.slane %v1166_v4, 4 }
  0x50   : > { %v290_v14 = vsub.f32 0.0, %v282_v6  ;;  %v1177_v15 = vmul.f32 %v288_v7, %v250_v43  ;;  %v306_v16 = vmin.f32 %v1164_v63, %v305_v9  ;;  %v317_v17 = vrot.slane %v1169_v8, 4 }
  0x51   : > { %v1181_v18 = vmul.f32 %v289_v10, %v250_v43  ;;  %v301_v19 = vrot.slane %v300_v12, 2  ;;  %v312_v20 = vmin.f32 %v1166_v4, %v311_v13  ;;  %v323_v0 = vrot.slane %v1173_v11, 4 }
  0x52   : > { %817 = vmatpush3.bf16.msra.mxu0 %v816_v60  ;;  %v1185_v21 = vmul.f32 %v290_v14, %v250_v43  ;;  %v307_v22 = vrot.slane %v306_v16, 2  ;;  %v318_v23 = vmin.f32 %v1169_v8, %v317_v17  ;;  %v329_v24 = vrot.slane %v1177_v15, 4 }
  0x53   : > { %v302_v25 = vmin.f32 %v300_v12, %v301_v19  ;;  %v313_v26 = vrot.slane %v312_v20, 2  ;;  %v324_v27 = vmin.f32 %v1173_v11, %v323_v0  ;;  %v335_v28 = vrot.slane %v1181_v18, 4 }
  0x54   : > { %v308_v29 = vmin.f32 %v306_v16, %v307_v22  ;;  %v319_v30 = vrot.slane %v318_v23, 2  ;;  %v330_v31 = vmin.f32 %v1177_v15, %v329_v24  ;;  %v341_v32 = vrot.slane %v1185_v21, 4 }
  0x55   : > { %v303_v33 = vrot.slane %v302_v25, 1  ;;  %v314_v34 = vmin.f32 %v312_v20, %v313_v26  ;;  %v325_v35 = vrot.slane %v324_v27, 2  ;;  %v336_v36 = vmin.f32 %v1181_v18, %v335_v28 }
  0x56   : > { %v309_v37 = vrot.slane %v308_v29, 1  ;;  %v320_v38 = vmin.f32 %v318_v23, %v319_v30  ;;  %v331_v39 = vrot.slane %v330_v31, 2  ;;  %v342_v40 = vmin.f32 %v1185_v21, %v341_v32 }
  0x57   : > { %v1195_v41 = vmin.f32 %v302_v25, %v303_v33  ;;  %v315_v42 = vrot.slane %v314_v34, 1  ;;  %v326_v43 = vmin.f32 %v324_v27, %v325_v35  ;;  %v337_v44 = vrot.slane %v336_v36, 2 }
  0x58   : > { %v1197_v45 = vmin.f32 %v308_v29, %v309_v37  ;;  %v321_v46 = vrot.slane %v320_v38, 1  ;;  %v332_v47 = vmin.f32 %v330_v31, %v331_v39  ;;  %v343_v48 = vrot.slane %v342_v40, 2 }
  0x59   : > { %v1199_v49 = vmin.f32 %v314_v34, %v315_v42  ;;  %v327_v50 = vrot.slane %v326_v43, 1  ;;  %v338_v51 = vmin.f32 %v336_v36, %v337_v44  ;;  %vm347_vm1 = vcmp.le.f32.partialorder %v1160_v57, %v1195_v41 }
  0x5a   : > { %v1203_v52 = vmin.f32 %v320_v38, %v321_v46  ;;  %v333_v53 = vrot.slane %v332_v47, 1  ;;  %v344_v54 = vmin.f32 %v342_v40, %v343_v48  ;;  %vm348_vm2 = vcmp.le.f32.partialorder %v1164_v63, %v1197_v45  ;;  %v249_v40 = vld [vmem:[%s1365_s0] sm:$0xff] }
  0x5b   : > { %v1207_v55 = vmin.f32 %v326_v43, %v327_v50  ;;  %v339_v56 = vrot.slane %v338_v51, 1  ;;  %vm349_vm3 = vcmp.le.f32.partialorder %v1166_v4, %v1199_v49  ;;  %v357_v59 = vsel %vm347_vm1, %v1162_v58, 8 }
  0x5c   : > { %v1215_v60 = vmin.f32 %v332_v47, %v333_v53  ;;  %v345_v61 = vrot.slane %v344_v54, 1  ;;  %vm350_vm4 = vcmp.le.f32.partialorder %v1169_v8, %v1203_v52  ;;  %v358_v62 = vsel %vm348_vm2, %v1162_v58, 8 }
  0x5d   : > { %v1223_v1 = vmin.f32 %v338_v51, %v339_v56  ;;  %v359_v2 = vsel %vm349_vm3, %v1162_v58, 8  ;;  %v360_v3 = vsel %vm350_vm4, %v1162_v58, 8  ;;  %vm351_vm5 = vcmp.le.f32.partialorder %v1173_v11, %v1207_v55 }
  0x5e   : > { %v1233_v5 = vmin.f32 %v344_v54, %v345_v61  ;;  %vm352_vm6 = vcmp.le.f32.partialorder %v1177_v15, %v1215_v60  ;;  %v365_v6 = vrot.slane %v357_v59, 4  ;;  %v361_v7 = vsel %vm351_vm5, %v1162_v58, 8 }
  0x5f   : > { %vm353_vm7 = vcmp.le.f32.partialorder %v1181_v18, %v1223_v1  ;;  %v374_v9 = vrot.slane %v358_v62, 4  ;;  %v383_v10 = vrot.slane %v359_v2, 4  ;;  %v362_v12 = vsel %vm352_vm6, %v1162_v58, 8 }
  0x60   : > { %vm354_vm8 = vcmp.le.f32.partialorder %v1185_v21, %v1233_v5  ;;  %vm366_vm9 = vcmp.lt.s32.totalorder %v357_v59, %v365_v6  ;;  %v392_v13 = vrot.slane %v360_v3, 4  ;;  %v363_v14 = vsel %vm353_vm7, %v1162_v58, 8 }
  0x61   : > { %v367_v16 = vsel %vm366_vm9, %v357_v59, %v365_v6  ;;  %vm375_vm10 = vcmp.lt.s32.totalorder %v358_v62, %v374_v9  ;;  %vm384_vm11 = vcmp.lt.s32.totalorder %v359_v2, %v383_v10  ;;  %v401_v24 = vrot.slane %v361_v7, 4 }
  0x62   : > { %v368_v17 = vrot.slane %v367_v16, 2  ;;  %v376_v19 = vsel %vm375_vm10, %v358_v62, %v374_v9  ;;  %v385_v20 = vsel %vm384_vm11, %v359_v2, %v383_v10  ;;  %vm393_vm12 = vcmp.lt.s32.totalorder %v360_v3, %v392_v13 }
  0x63   : > { %v377_v0 = vrot.slane %v376_v19, 2  ;;  %v386_v22 = vrot.slane %v385_v20, 2  ;;  %v394_v23 = vsel %vm393_vm12, %v360_v3, %v392_v13  ;;  %v410_v26 = vrot.slane %v362_v12, 4 }
  0x64   : > { %vm369_vm13 = vcmp.lt.s32.totalorder %v367_v16, %v368_v17  ;;  %v395_v25 = vrot.slane %v394_v23, 2  ;;  %v419_v27 = vrot.slane %v363_v14, 4  ;;  %vm402_vm0 = vcmp.lt.s32.totalorder %v361_v7, %v401_v24 }
  0x65   : > { %v370_v28 = vsel %vm369_vm13, %v367_v16, %v368_v17  ;;  %vm378_vm14 = vcmp.lt.s32.totalorder %v376_v19, %v377_v0  ;;  %vm387_vm15 = vcmp.lt.s32.totalorder %v385_v20, %v386_v22  ;;  %v403_v35 = vsel %vm402_vm0, %v361_v7, %v401_v24 }
  0x66   : > { %v371_v29 = vrot.slane %v370_v28, 1  ;;  %v379_v30 = vsel %vm378_vm14, %v376_v19, %v377_v0  ;;  %v388_v31 = vsel %vm387_vm15, %v385_v20, %v386_v22  ;;  %vm396_vm9 = vcmp.lt.s32.totalorder %v394_v23, %v395_v25 }
  0x67   : > { %v380_v32 = vrot.slane %v379_v30, 1  ;;  %v389_v33 = vrot.slane %v388_v31, 1  ;;  %v397_v34 = vsel %vm396_vm9, %v394_v23, %v395_v25  ;;  %v404_v37 = vrot.slane %v403_v35, 2 }
  0x68   : > { %vm372_vm10 = vcmp.lt.s32.totalorder %v370_v28, %v371_v29  ;;  %v398_v36 = vrot.slane %v397_v34, 1  ;;  %vm411_vm11 = vcmp.lt.s32.totalorder %v362_v12, %v410_v26  ;;  %v364_v38 = vsel %vm354_vm8, %v1162_v58, 8 }
  0x69   : > { %vm381_vm12 = vcmp.lt.s32.totalorder %v379_v30, %v380_v32  ;;  %vm390_vm13 = vcmp.lt.s32.totalorder %v388_v31, %v389_v33  ;;  %v412_v39 = vsel %vm411_vm11, %v362_v12, %v410_v26  ;;  %v1262_v42 = vsel %vm372_vm10, %v370_v28, %v371_v29 }
  0x6a   : > { %v1264_v43 = vsel %vm381_vm12, %v379_v30, %v380_v32  ;;  %vm399_vm14 = vcmp.lt.s32.totalorder %v397_v34, %v398_v36  ;;  %vm405_vm15 = vcmp.lt.s32.totalorder %v403_v35, %v404_v37  ;;  %v1266_v44 = vsel %vm390_vm13, %v388_v31, %v389_v33 }
  0x6b   : > { %v406_v46 = vsel %vm405_vm15, %v403_v35, %v404_v37  ;;  %v413_v47 = vrot.slane %v412_v39, 2  ;;  %vm420_vm0 = vcmp.lt.s32.totalorder %v363_v14, %v419_v27  ;;  %v1268_v48 = vsel %vm399_vm14, %v397_v34, %v398_v36 }
  0x6c   : > { %v407_v58 = vrot.slane %v406_v46, 1  ;;  %v421_v50 = vsel %vm420_vm0, %v363_v14, %v419_v27  ;;  %v428_v51 = vrot.slane %v364_v38, 4  ;;  %v437_v54 = vsel %vm347_vm1, %v249_v40, -inf }
  0x6d   : > { %vm414_vm9 = vcmp.lt.s32.totalorder %v412_v39, %v413_v47  ;;  %v422_v53 = vrot.slane %v421_v50, 2  ;;  %v438_v56 = vsel %vm348_vm2, %v249_v40, -inf  ;;  %v439_v61 = vsel %vm349_vm3, %v249_v40, -inf }
  0x6e   : > { %vm408_vm10 = vcmp.lt.s32.totalorder %v406_v46, %v407_v58  ;;  %v415_v59 = vsel %vm414_vm9, %v412_v39, %v413_v47  ;;  %vm429_vm11 = vcmp.lt.s32.totalorder %v364_v38, %v428_v51  ;;  %v440_v3 = vsel %vm350_vm4, %v249_v40, -inf }
  0x6f   : > { %v416_v62 = vrot.slane %v415_v59, 1  ;;  %vm423_vm12 = vcmp.lt.s32.totalorder %v421_v50, %v422_v53  ;;  %v430_v2 = vsel %vm429_vm11, %v364_v38, %v428_v51  ;;  %v1282_v57 = vsel %vm408_vm10, %v406_v46, %v407_v58 }
  0x70   : > { %v424_v41 = vsel %vm423_vm12, %v421_v50, %v422_v53  ;;  %v431_v6 = vrot.slane %v430_v2, 2  ;;  %v441_v63 = vsel %vm351_vm5, %v249_v40, -inf  ;;  %v442_v4 = vsel %vm352_vm6, %v249_v40, -inf }
  0x71   : > { %vm417_vm1 = vcmp.lt.s32.totalorder %v415_v59, %v416_v62  ;;  %v425_v45 = vrot.slane %v424_v41, 1  ;;  %v443_v49 = vsel %vm353_vm7, %v249_v40, -inf  ;;  %v444_v8 = vsel %vm354_vm8, %v249_v40, -inf }
  0x72   : > { %vm432_vm2 = vcmp.lt.s32.totalorder %v430_v2, %v431_v6  ;;  %v445_v52 = vrot.slane %v437_v54, 4  ;;  %v451_v7 = vrot.slane %v438_v56, 4  ;;  %v457_v55 = vrot.slane %v439_v61, 4 }
  0x73   : > { %vm426_vm3 = vcmp.lt.s32.totalorder %v424_v41, %v425_v45  ;;  %v433_v11 = vsel %vm432_vm2, %v430_v2, %v431_v6  ;;  %v463_v9 = vrot.slane %v440_v3, 4  ;;  %vm493_vm4 = vcmask 1041409  }
  0x74   : > { %v418_v10 = vsel %vm417_vm1, %v415_v59, %v416_v62  ;;  %v434_v12 = vrot.slane %v433_v11, 1  ;;  %v446_v15 = vmax.f32 %v437_v54, %v445_v52  ;;  %v452_v60 = vmax.f32 %v438_v56, %v451_v7 }
  0x75   : > { %vm495_vm5 = vcmask 1042434   ;;  %v458_v13 = vmax.f32 %v439_v61, %v457_v55  ;;  %v464_v18 = vmax.f32 %v440_v3, %v463_v9  ;;  %v469_v1 = vrot.slane %v441_v63, 4 }
  0x76   : > { %v475_v14 = vrot.slane %v442_v4, 4  ;;  %vm497_vm6 = vcmask 1043459   ;;  %v427_v16 = vsel %vm426_vm3, %v424_v41, %v425_v45  ;;  %v447_v21 = vrot.slane %v446_v15, 2 }
  0x77   : > { %v453_v5 = vrot.slane %v452_v60, 2  ;;  %v481_v17 = vrot.slane %v443_v49, 4  ;;  %vm499_vm7 = vcmask 1044484   ;;  %vm1296_vm8 = vcmp.lt.s32.totalorder %v433_v11, %v434_v12 }
  0x78   : > { %v459_v20 = vrot.slane %v458_v13, 2  ;;  %v465_v0 = vrot.slane %v464_v18, 2  ;;  %v470_v22 = vmax.f32 %v441_v63, %v469_v1  ;;  %vm501_vm13 = vcmask 1045509  }
  0x79   : > { %v448_v23 = vmax.f32 %v446_v15, %v447_v21  ;;  %v454_v24 = vmax.f32 %v452_v60, %v453_v5  ;;  %v476_v25 = vmax.f32 %v442_v4, %v475_v14  ;;  %v482_v26 = vmax.f32 %v443_v49, %v481_v17 }
  0x7a   : > { %vm503_vm14 = vcmask 1046534   ;;  %v460_v27 = vmax.f32 %v458_v13, %v459_v20  ;;  %v466_v28 = vmax.f32 %v464_v18, %v465_v0  ;;  %v471_v29 = vrot.slane %v470_v22, 2 }
  0x7b   : > { %v487_v30 = vrot.slane %v444_v8, 4  ;;  %v449_v31 = vrot.slane %v448_v23, 1  ;;  %v455_v32 = vrot.slane %v454_v24, 1  ;;  %v477_v33 = vrot.slane %v476_v25, 2 }
  0x7c   : > { %v483_v34 = vrot.slane %v482_v26, 2  ;;  %v461_v35 = vrot.slane %v460_v27, 1  ;;  %v467_v36 = vrot.slane %v466_v28, 1  ;;  %v472_v37 = vmax.f32 %v470_v22, %v471_v29 }
  0x7d   : > { %v488_v38 = vmax.f32 %v444_v8, %v487_v30  ;;  %v450_v39 = vmax.f32 %v448_v23, %v449_v31  ;;  %v456_v40 = vmax.f32 %v454_v24, %v455_v32  ;;  %v478_v46 = vmax.f32 %v476_v25, %v477_v33 }
  0x7e   : > { %v484_v47 = vmax.f32 %v482_v26, %v483_v34  ;;  %v462_v58 = vmax.f32 %v460_v27, %v461_v35  ;;  %v468_v50 = vmax.f32 %v466_v28, %v467_v36  ;;  %v473_v51 = vrot.slane %v472_v37, 1 }
  0x7f   : > { %v489_v53 = vrot.slane %v488_v38, 2  ;;  %v479_v54 = vrot.slane %v478_v46, 1  ;;  %v494_v59 = vsel %vm493_vm4, %v1264_v43, %v1262_v42  ;;  %v532_v61 = vsel %vm493_vm4, %v456_v40, %v450_v39 }
  0x80   : > { %v485_v56 = vrot.slane %v484_v47, 1  ;;  %v474_v62 = vmax.f32 %v472_v37, %v473_v51  ;;  %v496_v3 = vsel %vm495_vm5, %v1266_v44, %v494_v59  ;;  %v533_v41 = vsel %vm495_vm5, %v462_v58, %v532_v61 }
  0x81   : > { %v490_v2 = vmax.f32 %v488_v38, %v489_v53  ;;  %v480_v6 = vmax.f32 %v478_v46, %v479_v54  ;;  %v498_v45 = vsel %vm497_vm6, %v1268_v48, %v496_v3  ;;  %v534_v4 = vsel %vm497_vm6, %v468_v50, %v533_v41 }
  0x82   : > { %v486_v63 = vmax.f32 %v484_v47, %v485_v56  ;;  %v436_v42 = vsel %vm1296_vm8, %v433_v11, %v434_v12  ;;  %v500_v49 = vsel %vm499_vm7, %v1282_v57, %v498_v45  ;;  %v535_v44 = vsel %vm499_vm7, %v474_v62, %v534_v4 }
  0x83   : > { %v491_v43 = vrot.slane %v490_v2, 1  ;;  %v502_v8 = vsel %vm501_vm13, %v418_v10, %v500_v49  ;;  %vm505_vm15 = vcmask 1047559   ;;  %v536_v52 = vsel %vm501_vm13, %v480_v6, %v535_v44 }
  0x84   : > { %v504_v48 = vsel %vm503_vm14, %v427_v16, %v502_v8  ;;  %v537_v55 = vsel %vm503_vm14, %v486_v63, %v536_v52 }
  0x85   : > { %v492_v7 = vmax.f32 %v490_v2, %v491_v43  ;;  %v506_v9 = vsel %vm505_vm15, %v436_v42, %v504_v48 }
  0x86   : > { %507 = vst [vmem:[%s232_s12] sm:$0xff] %v506_v9 }
  0x87   : > { %v538_v11 = vsel %vm505_vm15, %v492_v7, %v537_v55 }
  0x88   : > { %792 = vmatmul.mubr.f32.vlgmr.msra.gmra.mrb[0].mxu0 %v538_v11 }
  0x89   : > { %928 = shalt.err (!%p925_p7)
}
  0x8a   : > { %s929_s7 = scalar_lea.hbm %s1324_s17, 128  ;;  %s933_s10 = scalar_lea.hbm %s1369_s4, 256 }
  0x8b   : > { %p930_p8 = scmp.ne.s32.totalorder %s1324_s17, %s929_s7  ;;  %p934_p1 = scmp.lt.u32.totalorder %s1324_s17, %s1369_s4 }
  0x8c   : > { %p935_p0 = scmp.lt.u32.totalorder %s933_s10, %s929_s7  ;;  %p937_p6 = scmp.lt.u32.totalorder %s929_s7, %s1324_s17 }
  0x8d   : > { %p931_p11 = pnand %p930_p8, %p1383_p9 }
  0x8e   : > { %p936_p5 = por %p935_p0, %p934_p1 }
  0x8f   : > { %p932_p13 = pneg %p931_p11 }
  0x90   : > { %p938_p10 = por %p937_p6, %p936_p5 }
  0x92   : > { %p939_p12 = pnand %p938_p10, %p932_p13 }
  0x94   : > { %942 = shalt.err (!%p939_p12)
}
  0x95   : > { %822 = dma.vmem_to_hbm [thread:$0]  (%p1383_p9), %s631_s14, 128, %s1324_s17, %s613_s23   ;;  %vm610_vm0 = vcmask 31744  }
  0x96   : > { %p245_p2 = scmp.lt.s32.totalorder %s1039_s22, 1 }
  0x98   : > { %s1392_s22 = smov (!%p245_p2, %s1039_s22), 1 }
  0x99   : > { %s737_s13 = sshll.u32 %s1392_s22, 3 }
  0x9a   : > { %s248_s26 = scalar_lea.vmem %s1370_s5, %s737_s13 }
 0x15b   : > { %v606_v57 = vpop.f32.mrb[0].mxu0 }
 0x15c   : > { %611 = vst.msk [vmem:[%s248_s26] sm:$0xff] %vm610_vm0, %v606_v57  ;;  %v793_v10 = vpop.f32.mrb[1].mxu0 }
 0x15d PF: > { %p834_p3 = scmp.ge.s32.totalorder %s981_s21, 2  ;;  %s645_s28 = sand.u32 1, %s969_s18  }
 0x15e   : > { %p1384_p4 = scmp.ne.s32.totalorder %s1375_s29, 0  ;;  %s646_s14 = scalar_lea.sflag [#allocation4], %s645_s28 }
 0x160   : > { %p829_p7 = pnand %p834_p3, %p1384_p4 }
 0x162   : > { %964 = dma.done.wait (!%p829_p7), %s646_s14, 128  }
 0x163   : > { %966 = vsyncadd (!%p829_p7), %s646_s14, 4294967168  ;;  %p17_p9 = scmp.ge.s32.totalorder %s1043_s24, 4   ;;  %s1385_s18 = smov %s973_s19 }
 0x164   : > { %s1386_s19 = smov %s977_s20  ;;  %s1387_s20 = smov %s1054_s27 }
 0x165   : > { %s1388_s21 = smov %s1043_s24  ;;  %19 = sbr.rel (!%p17_p9) target bundleno = 4 (0x4), region = 88 }
 0x16c   :  { %658 = vsyncpa [#allocation3], 1 }
 0x16d   :  { %660 = vsyncpa [#allocation3 + $0x1], 1 }
 0x16e   :  { %661 = vsyncpa [#allocation4], 1 }
 0x16f   :  { %663 = vsyncpa [#allocation4 + $0x1], 1 }

</bundles_post_ra>
